<compile_context>
chip_gen: v7x
topology: tpu7x:2x2x1
jax: 0.10.0
libtpu: 0.0.40
codegen_flags: <defaults>
</compile_context>

<pallas_src>
import functools

import jax
import jax.numpy as jnp
from jax.experimental import pallas as pl
from jax.experimental.pallas import tpu as pltpu


def _cdiv(a, b):
    return -(-a // b)


def _outconv_kernel(x_ref, w_ref, b_ref, o_ref, *, c_in, c_out):
    # x_ref: (bn, C_in, S, 128) VMEM    w_ref: (C_out, C_in) f32 SMEM
    # b_ref: (C_out,)          f32 SMEM o_ref: (bn, C_out, S, 128) VMEM
    for co in range(c_out):
        # Stream each input channel from VMEM per output channel: keeps only
        # one (bn, S, 128) accumulator live (VMEM re-reads are far cheaper
        # than the vreg pressure of holding all channels).
        acc = x_ref[:, 0, :, :].astype(jnp.float32) * w_ref[co, 0]
        for ci in range(1, c_in):
            acc = acc + x_ref[:, ci, :, :].astype(jnp.float32) * w_ref[co, ci]
        acc = acc + b_ref[co]
        o_ref[:, co, :, :] = acc.astype(o_ref.dtype)


def out_conv(x_nchw, weight, bias, *,
             vmem_budget_bytes=40 * 1024 * 1024,
             max_rows_per_block=2048):
    """1x1 Conv2d forward (PyTorch OutConv).

    x_nchw: (N, C_in, H, W); weight: (C_out, C_in, 1, 1); bias: (C_out,).
    Returns (N, C_out, H, W).
    """
    N, C_in, H, W = x_nchw.shape
    C_out = weight.shape[0]
    HW = H * W
    itemsize = jnp.dtype(x_nchw.dtype).itemsize

    # ---- Repack spatial axis into dense (rows, 128) lane tiles. -----------
    rows_total = _cdiv(HW, 128)            # 128-lane rows per image
    HW_pad = rows_total * 128
    x3d = x_nchw.reshape(N, C_in, HW)      # contiguous reshape: free
    if HW_pad != HW:
        # Ragged fallback: pad spatial to the next multiple of 128 (<= 127
        # elements).  Costs one extra pass over x; only taken when
        # H*W % 128 != 0.  Common conv feature maps never hit this.
        x3d = jnp.pad(x3d, ((0, 0), (0, 0), (0, HW_pad - HW)))
    x4d = x3d.reshape(N, C_in, rows_total, 128)

    # ---- Block sizing: amortize ~0.35 us/step while fitting scoped VMEM. --
    # Double-buffered per-step footprint = 2 * (C_in + C_out) * rows * 512B.
    bytes_per_row = (C_in + C_out) * 128 * itemsize * 2
    max_rows = int(vmem_budget_bytes // max(bytes_per_row, 1))
    max_rows = max(8, min(max_rows, max_rows_per_block))

    if rows_total >= max_rows:
        s_blk = max(8, (max_rows // 8) * 8)    # multiple of 8 sublanes
        bn = 1
    else:
        s_blk = rows_total                     # full spatial extent per block
        bn = min(N, max(1, max_rows // max(rows_total, 1)))

    grid = (_cdiv(N, bn), _cdiv(rows_total, s_blk))

    # Params live in SMEM; keep them f32 regardless of input dtype.
    w2d = weight.reshape(C_out, C_in).astype(jnp.float32)
    b1d = bias.reshape(C_out).astype(jnp.float32)

    kernel = functools.partial(_outconv_kernel, c_in=C_in, c_out=C_out)

    cost = pl.CostEstimate(
        flops=2 * N * HW * C_in * C_out,
        transcendentals=0,
        bytes_accessed=(C_in + C_out) * N * HW * itemsize,
    )

    out4d = pl.pallas_call(
        kernel,
        out_shape=jax.ShapeDtypeStruct((N, C_out, rows_total, 128),
                                       x_nchw.dtype),
        grid=grid,
        in_specs=[
            pl.BlockSpec((bn, C_in, s_blk, 128), lambda b, s: (b, 0, s, 0)),
            pl.BlockSpec(memory_space=pltpu.MemorySpace.SMEM),   # weight
            pl.BlockSpec(memory_space=pltpu.MemorySpace.SMEM),   # bias
        ],
        out_specs=pl.BlockSpec((bn, C_out, s_blk, 128),
                               lambda b, s: (b, 0, s, 0)),
        compiler_params=pltpu.CompilerParams(
            dimension_semantics=("parallel", "parallel"),
            vmem_limit_bytes=48 * 1024 * 1024),
        cost_estimate=cost,
    )(x4d, w2d, b1d)

    out3d = out4d.reshape(N, C_out, HW_pad)
    if HW_pad != HW:
        out3d = out3d[:, :, :HW]
    return out3d.reshape(N, C_out, H, W)


if __name__ == "__main__":
    key = jax.random.PRNGKey(0)
    k_x, k_w, k_b = jax.random.split(key, 3)

    N, C_in, C_out, H, W = 2, 4, 3, 16, 16
    x = jax.random.normal(k_x, (N, C_in, H, W), dtype=jnp.float32)
    # Deterministic synthetic parameters (shapes match nn.Conv2d(C_in, C_out, 1)).
    weight = jax.random.normal(k_w, (C_out, C_in, 1, 1), dtype=jnp.float32) * 0.1
    bias = jax.random.normal(k_b, (C_out,), dtype=jnp.float32) * 0.1

    out = jax.block_until_ready(out_conv(x, weight, bias))

    # Reference: plain-JAX 1x1 conv (einsum over channels) + bias.
    ref = jnp.einsum("nchw,oc->nohw", x, weight.reshape(C_out, C_in)) \
        + bias[None, :, None, None]
    assert out.shape == (N, C_out, H, W)
    assert jnp.allclose(out, ref, atol=1e-5, rtol=1e-5), "mismatch vs reference"

    print("KERNEL_OK")
</pallas_src>

<mosaic_0001>
module attributes {stable_mosaic.version = 11 : i64} {
  func.func @_outconv_kernel(%arg0: i32, %arg1: i32, %arg2: memref<2x4x2x128xf32, #tpu.memory_space<vmem>>, %arg3: memref<3x4xf32, #tpu.memory_space<smem>>, %arg4: memref<3xf32, #tpu.memory_space<smem>>, %arg5: memref<2x3x2x128xf32, #tpu.memory_space<vmem>>) attributes {dimension_semantics = [#tpu.dimension_semantics<parallel>, #tpu.dimension_semantics<parallel>], iteration_bounds = array<i64: 1, 1>, scalar_prefetch = 0 : i64, scratch_operands = 0 : i64, tpu.core_type = #tpu.core_type<tc>, window_params = [{transform_indices = @transform_0, window_bounds = array<i64: 2, 4, 2, 128>}, {transform_indices = @transform_1, window_bounds = array<i64: 3, 4>}, {transform_indices = @transform_2, window_bounds = array<i64: 3>}, {transform_indices = @transform_3, window_bounds = array<i64: 2, 3, 2, 128>}]} {
    %c0 = arith.constant 0 : index
    %c0_0 = arith.constant 0 : index
    %c0_1 = arith.constant 0 : index
    %c0_2 = arith.constant 0 : index
    %0 = vector.load %arg2[%c0, %c0_0, %c0_1, %c0_2] : memref<2x4x2x128xf32, #tpu.memory_space<vmem>>, vector<2x1x2x128xf32>
    %1 = vector.shape_cast %0 : vector<2x1x2x128xf32> to vector<2x2x128xf32>
    %c0_3 = arith.constant 0 : index
    %c0_4 = arith.constant 0 : index
    %2 = memref.load %arg3[%c0_3, %c0_4] : memref<3x4xf32, #tpu.memory_space<smem>>
    %3 = vector.broadcast %2 : f32 to vector<2x2x128xf32>
    %4 = arith.mulf %1, %3 : vector<2x2x128xf32>
    %c0_5 = arith.constant 0 : index
    %c1 = arith.constant 1 : index
    %c0_6 = arith.constant 0 : index
    %c0_7 = arith.constant 0 : index
    %5 = vector.load %arg2[%c0_5, %c1, %c0_6, %c0_7] : memref<2x4x2x128xf32, #tpu.memory_space<vmem>>, vector<2x1x2x128xf32>
    %6 = vector.shape_cast %5 : vector<2x1x2x128xf32> to vector<2x2x128xf32>
    %c0_8 = arith.constant 0 : index
    %c1_9 = arith.constant 1 : index
    %7 = memref.load %arg3[%c0_8, %c1_9] : memref<3x4xf32, #tpu.memory_space<smem>>
    %8 = vector.broadcast %7 : f32 to vector<2x2x128xf32>
    %9 = arith.mulf %6, %8 : vector<2x2x128xf32>
    %10 = arith.addf %4, %9 : vector<2x2x128xf32>
    %c0_10 = arith.constant 0 : index
    %c2 = arith.constant 2 : index
    %c0_11 = arith.constant 0 : index
    %c0_12 = arith.constant 0 : index
    %11 = vector.load %arg2[%c0_10, %c2, %c0_11, %c0_12] : memref<2x4x2x128xf32, #tpu.memory_space<vmem>>, vector<2x1x2x128xf32>
    %12 = vector.shape_cast %11 : vector<2x1x2x128xf32> to vector<2x2x128xf32>
    %c0_13 = arith.constant 0 : index
    %c2_14 = arith.constant 2 : index
    %13 = memref.load %arg3[%c0_13, %c2_14] : memref<3x4xf32, #tpu.memory_space<smem>>
    %14 = vector.broadcast %13 : f32 to vector<2x2x128xf32>
    %15 = arith.mulf %12, %14 : vector<2x2x128xf32>
    %16 = arith.addf %10, %15 : vector<2x2x128xf32>
    %c0_15 = arith.constant 0 : index
    %c3 = arith.constant 3 : index
    %c0_16 = arith.constant 0 : index
    %c0_17 = arith.constant 0 : index
    %17 = vector.load %arg2[%c0_15, %c3, %c0_16, %c0_17] : memref<2x4x2x128xf32, #tpu.memory_space<vmem>>, vector<2x1x2x128xf32>
    %18 = vector.shape_cast %17 : vector<2x1x2x128xf32> to vector<2x2x128xf32>
    %c0_18 = arith.constant 0 : index
    %c3_19 = arith.constant 3 : index
    %19 = memref.load %arg3[%c0_18, %c3_19] : memref<3x4xf32, #tpu.memory_space<smem>>
    %20 = vector.broadcast %19 : f32 to vector<2x2x128xf32>
    %21 = arith.mulf %18, %20 : vector<2x2x128xf32>
    %22 = arith.addf %16, %21 : vector<2x2x128xf32>
    %c0_20 = arith.constant 0 : index
    %23 = memref.load %arg4[%c0_20] : memref<3xf32, #tpu.memory_space<smem>>
    %24 = vector.broadcast %23 : f32 to vector<2x2x128xf32>
    %25 = arith.addf %22, %24 : vector<2x2x128xf32>
    %c0_21 = arith.constant 0 : index
    %c0_22 = arith.constant 0 : index
    %c0_23 = arith.constant 0 : index
    %c0_24 = arith.constant 0 : index
    %26 = vector.load %arg5[%c0_21, %c0_22, %c0_23, %c0_24] : memref<2x3x2x128xf32, #tpu.memory_space<vmem>>, vector<2x1x2x128xf32>
    %27 = vector.shape_cast %26 : vector<2x1x2x128xf32> to vector<2x2x128xf32>
    %28 = vector.shape_cast %25 : vector<2x2x128xf32> to vector<2x1x2x128xf32>
    tpu.vector_store %arg5[%c0_21, %c0_22, %c0_23, %c0_24], %28 {strides = array<i32>} : memref<2x3x2x128xf32, #tpu.memory_space<vmem>>, vector<2x1x2x128xf32>,
    %c0_25 = arith.constant 0 : index
    %c0_26 = arith.constant 0 : index
    %c0_27 = arith.constant 0 : index
    %c0_28 = arith.constant 0 : index
    %29 = vector.load %arg2[%c0_25, %c0_26, %c0_27, %c0_28] : memref<2x4x2x128xf32, #tpu.memory_space<vmem>>, vector<2x1x2x128xf32>
    %30 = vector.shape_cast %29 : vector<2x1x2x128xf32> to vector<2x2x128xf32>
    %c1_29 = arith.constant 1 : index
    %c0_30 = arith.constant 0 : index
    %31 = memref.load %arg3[%c1_29, %c0_30] : memref<3x4xf32, #tpu.memory_space<smem>>
    %32 = vector.broadcast %31 : f32 to vector<2x2x128xf32>
    %33 = arith.mulf %30, %32 : vector<2x2x128xf32>
    %c0_31 = arith.constant 0 : index
    %c1_32 = arith.constant 1 : index
    %c0_33 = arith.constant 0 : index
    %c0_34 = arith.constant 0 : index
    %34 = vector.load %arg2[%c0_31, %c1_32, %c0_33, %c0_34] : memref<2x4x2x128xf32, #tpu.memory_space<vmem>>, vector<2x1x2x128xf32>
    %35 = vector.shape_cast %34 : vector<2x1x2x128xf32> to vector<2x2x128xf32>
    %c1_35 = arith.constant 1 : index
    %c1_36 = arith.constant 1 : index
    %36 = memref.load %arg3[%c1_35, %c1_36] : memref<3x4xf32, #tpu.memory_space<smem>>
    %37 = vector.broadcast %36 : f32 to vector<2x2x128xf32>
    %38 = arith.mulf %35, %37 : vector<2x2x128xf32>
    %39 = arith.addf %33, %38 : vector<2x2x128xf32>
    %c0_37 = arith.constant 0 : index
    %c2_38 = arith.constant 2 : index
    %c0_39 = arith.constant 0 : index
    %c0_40 = arith.constant 0 : index
    %40 = vector.load %arg2[%c0_37, %c2_38, %c0_39, %c0_40] : memref<2x4x2x128xf32, #tpu.memory_space<vmem>>, vector<2x1x2x128xf32>
    %41 = vector.shape_cast %40 : vector<2x1x2x128xf32> to vector<2x2x128xf32>
    %c1_41 = arith.constant 1 : index
    %c2_42 = arith.constant 2 : index
    %42 = memref.load %arg3[%c1_41, %c2_42] : memref<3x4xf32, #tpu.memory_space<smem>>
    %43 = vector.broadcast %42 : f32 to vector<2x2x128xf32>
    %44 = arith.mulf %41, %43 : vector<2x2x128xf32>
    %45 = arith.addf %39, %44 : vector<2x2x128xf32>
    %c0_43 = arith.constant 0 : index
    %c3_44 = arith.constant 3 : index
    %c0_45 = arith.constant 0 : index
    %c0_46 = arith.constant 0 : index
    %46 = vector.load %arg2[%c0_43, %c3_44, %c0_45, %c0_46] : memref<2x4x2x128xf32, #tpu.memory_space<vmem>>, vector<2x1x2x128xf32>
    %47 = vector.shape_cast %46 : vector<2x1x2x128xf32> to vector<2x2x128xf32>
    %c1_47 = arith.constant 1 : index
    %c3_48 = arith.constant 3 : index
    %48 = memref.load %arg3[%c1_47, %c3_48] : memref<3x4xf32, #tpu.memory_space<smem>>
    %49 = vector.broadcast %48 : f32 to vector<2x2x128xf32>
    %50 = arith.mulf %47, %49 : vector<2x2x128xf32>
    %51 = arith.addf %45, %50 : vector<2x2x128xf32>
    %c1_49 = arith.constant 1 : index
    %52 = memref.load %arg4[%c1_49] : memref<3xf32, #tpu.memory_space<smem>>
    %53 = vector.broadcast %52 : f32 to vector<2x2x128xf32>
    %54 = arith.addf %51, %53 : vector<2x2x128xf32>
    %c0_50 = arith.constant 0 : index
    %c1_51 = arith.constant 1 : index
    %c0_52 = arith.constant 0 : index
    %c0_53 = arith.constant 0 : index
    %55 = vector.load %arg5[%c0_50, %c1_51, %c0_52, %c0_53] : memref<2x3x2x128xf32, #tpu.memory_space<vmem>>, vector<2x1x2x128xf32>
    %56 = vector.shape_cast %55 : vector<2x1x2x128xf32> to vector<2x2x128xf32>
    %57 = vector.shape_cast %54 : vector<2x2x128xf32> to vector<2x1x2x128xf32>
    tpu.vector_store %arg5[%c0_50, %c1_51, %c0_52, %c0_53], %57 {strides = array<i32>} : memref<2x3x2x128xf32, #tpu.memory_space<vmem>>, vector<2x1x2x128xf32>,
    %c0_54 = arith.constant 0 : index
    %c0_55 = arith.constant 0 : index
    %c0_56 = arith.constant 0 : index
    %c0_57 = arith.constant 0 : index
    %58 = vector.load %arg2[%c0_54, %c0_55, %c0_56, %c0_57] : memref<2x4x2x128xf32, #tpu.memory_space<vmem>>, vector<2x1x2x128xf32>
    %59 = vector.shape_cast %58 : vector<2x1x2x128xf32> to vector<2x2x128xf32>
    %c2_58 = arith.constant 2 : index
    %c0_59 = arith.constant 0 : index
    %60 = memref.load %arg3[%c2_58, %c0_59] : memref<3x4xf32, #tpu.memory_space<smem>>
    %61 = vector.broadcast %60 : f32 to vector<2x2x128xf32>
    %62 = arith.mulf %59, %61 : vector<2x2x128xf32>
    %c0_60 = arith.constant 0 : index
    %c1_61 = arith.constant 1 : index
    %c0_62 = arith.constant 0 : index
    %c0_63 = arith.constant 0 : index
    %63 = vector.load %arg2[%c0_60, %c1_61, %c0_62, %c0_63] : memref<2x4x2x128xf32, #tpu.memory_space<vmem>>, vector<2x1x2x128xf32>
    %64 = vector.shape_cast %63 : vector<2x1x2x128xf32> to vector<2x2x128xf32>
    %c2_64 = arith.constant 2 : index
    %c1_65 = arith.constant 1 : index
    %65 = memref.load %arg3[%c2_64, %c1_65] : memref<3x4xf32, #tpu.memory_space<smem>>
    %66 = vector.broadcast %65 : f32 to vector<2x2x128xf32>
    %67 = arith.mulf %64, %66 : vector<2x2x128xf32>
    %68 = arith.addf %62, %67 : vector<2x2x128xf32>
    %c0_66 = arith.constant 0 : index
    %c2_67 = arith.constant 2 : index
    %c0_68 = arith.constant 0 : index
    %c0_69 = arith.constant 0 : index
    %69 = vector.load %arg2[%c0_66, %c2_67, %c0_68, %c0_69] : memref<2x4x2x128xf32, #tpu.memory_space<vmem>>, vector<2x1x2x128xf32>
    %70 = vector.shape_cast %69 : vector<2x1x2x128xf32> to vector<2x2x128xf32>
    %c2_70 = arith.constant 2 : index
    %c2_71 = arith.constant 2 : index
    %71 = memref.load %arg3[%c2_70, %c2_71] : memref<3x4xf32, #tpu.memory_space<smem>>
    %72 = vector.broadcast %71 : f32 to vector<2x2x128xf32>
    %73 = arith.mulf %70, %72 : vector<2x2x128xf32>
    %74 = arith.addf %68, %73 : vector<2x2x128xf32>
    %c0_72 = arith.constant 0 : index
    %c3_73 = arith.constant 3 : index
    %c0_74 = arith.constant 0 : index
    %c0_75 = arith.constant 0 : index
    %75 = vector.load %arg2[%c0_72, %c3_73, %c0_74, %c0_75] : memref<2x4x2x128xf32, #tpu.memory_space<vmem>>, vector<2x1x2x128xf32>
    %76 = vector.shape_cast %75 : vector<2x1x2x128xf32> to vector<2x2x128xf32>
    %c2_76 = arith.constant 2 : index
    %c3_77 = arith.constant 3 : index
    %77 = memref.load %arg3[%c2_76, %c3_77] : memref<3x4xf32, #tpu.memory_space<smem>>
    %78 = vector.broadcast %77 : f32 to vector<2x2x128xf32>
    %79 = arith.mulf %76, %78 : vector<2x2x128xf32>
    %80 = arith.addf %74, %79 : vector<2x2x128xf32>
    %c2_78 = arith.constant 2 : index
    %81 = memref.load %arg4[%c2_78] : memref<3xf32, #tpu.memory_space<smem>>
    %82 = vector.broadcast %81 : f32 to vector<2x2x128xf32>
    %83 = arith.addf %80, %82 : vector<2x2x128xf32>
    %c0_79 = arith.constant 0 : index
    %c2_80 = arith.constant 2 : index
    %c0_81 = arith.constant 0 : index
    %c0_82 = arith.constant 0 : index
    %84 = vector.load %arg5[%c0_79, %c2_80, %c0_81, %c0_82] : memref<2x3x2x128xf32, #tpu.memory_space<vmem>>, vector<2x1x2x128xf32>
    %85 = vector.shape_cast %84 : vector<2x1x2x128xf32> to vector<2x2x128xf32>
    %86 = vector.shape_cast %83 : vector<2x2x128xf32> to vector<2x1x2x128xf32>
    tpu.vector_store %arg5[%c0_79, %c2_80, %c0_81, %c0_82], %86 {strides = array<i32>} : memref<2x3x2x128xf32, #tpu.memory_space<vmem>>, vector<2x1x2x128xf32>,
    return
  }
  func.func @transform_0(%arg0: i32, %arg1: i32) -> (i32, i32, i32, i32) {
    %c0_i32 = arith.constant 0 : i32
    %c0_i32_0 = arith.constant 0 : i32
    %c0_i32_1 = arith.constant 0 : i32
    return %arg0, %c0_i32, %arg1, %c0_i32_0 : i32, i32, i32, i32
  }
  func.func @transform_1(%arg0: i32, %arg1: i32) -> (i32, i32) {
    %c0_i32 = arith.constant 0 : i32
    %c0_i32_0 = arith.constant 0 : i32
    %c0_i32_1 = arith.constant 0 : i32
    return %c0_i32, %c0_i32_0 : i32, i32
  }
  func.func @transform_2(%arg0: i32, %arg1: i32) -> i32 {
    %c0_i32 = arith.constant 0 : i32
    %c0_i32_0 = arith.constant 0 : i32
    return %c0_i32 : i32
  }
  func.func @transform_3(%arg0: i32, %arg1: i32) -> (i32, i32, i32, i32) {
    %c0_i32 = arith.constant 0 : i32
    %c0_i32_0 = arith.constant 0 : i32
    %c0_i32_1 = arith.constant 0 : i32
    return %arg0, %c0_i32, %arg1, %c0_i32_0 : i32, i32, i32, i32
  }
}

</mosaic_0001>

<bundles_post_ra>
// kernel: tpu_custom_call.1
= control target key start
LH: loop header
LB: loop body
LE: loop exit
PB: predicated region body
PF: predicated region fallthrough
CT: control target
= control target key end

     0   :  { %8 = vsyncpa [#allocation3], 0  ;;  %s384_s0 = inlined_call_operand.hbm [shape: f32[2,4,2,128], index: 0, kind: input, shape index: {}]   ;;  %s385_s1 = inlined_call_operand.hbm [shape: f32[3,4], index: 1, kind: input, shape index: {}]   ;;  %s386_s2 = inlined_call_operand.vmem [shape: f32[3], index: 2, kind: input, shape index: {}]   ;;  %s387_s3 = inlined_call_operand.hbm [shape: f32[2,3,2,128], index: 3, kind: output, shape index: {}]  }
   0x1   :  { %9 = vsyncpa [#allocation5], 0 }
   0x2   :  { %10 = vsyncpa [#allocation6], 0 }
   0x3   :  { %11 = vsyncpa [#allocation4], 0  ;;  %s277_s12 = smov [#allocation2]   ;;  %s203_s16 = scalar_lea.hbm %s384_s0, 256 }
   0x4   :  { %s17_s13 = sshll.u32 %s277_s12, 4  ;;  %p204_p0 = scmp.ne.s32.totalorder %s384_s0, %s203_s16  ;;  %s18_s13 = int_to_ptr.vmem [resolvable:$true] %s17_s13 }
   0x5   :  { %p207_p1 = scmp.lt.u32.totalorder %s203_s16, %s384_s0 }
   0x7   :  { %p209_p2 = pnand %p207_p1, %p204_p0 }
   0x9   :  { %212 = shalt.err (!%p209_p2)
}
   0xa   :  { %s213_s21 = scalar_lea.vmem %s18_s13, 256  ;;  %p218_p4 = scmp.lt.s32.totalorder %s18_s13, %s18_s13 }
   0xb   :  { %p214_p3 = scmp.ne.s32.totalorder %s18_s13, %s213_s21  ;;  %p219_p5 = scmp.lt.s32.totalorder %s213_s21, %s213_s21 }
   0xd   :  { %p220_p6 = por %p219_p5, %p218_p4 }
   0xf   :  { %p221_p7 = pnand %p220_p6, %p214_p3 }
  0x11   :  { %224 = shalt.err (!%p221_p7)
}
  0x12   :  { %s278_s22 = smov 32   ;;  %s279_s23 = smov 2  }
  0x13   :  { %23 = dma.hbm_to_vmem [thread:$0]  %s384_s0, 256, %s18_s13, [#allocation3], %s278_s22, %s278_s22, %s279_s23  }
  0x14   :  { %s225_s28 = scalar_lea.hbm %s385_s1, 64 }
  0x15   :  { %p226_p8 = scmp.ne.s32.totalorder %s385_s1, %s225_s28  ;;  %p229_p9 = scmp.lt.u32.totalorder %s225_s28, %s385_s1 }
  0x17   :  { %p231_p10 = pnand %p229_p9, %p226_p8 }
  0x19   :  { %234 = shalt.err (!%p231_p10)
}
  0x1a   :  { %s280_s6 = smov [#allocation7]   ;;  %s38_s10 = sshll.u32 %s386_s2, 4  ;;  %s39_s10 = int_to_ptr.vmem [resolvable:$true] %s38_s10 }
  0x1b   :  { %31 = dma.hbm_to_smem %s385_s1, 64, %s280_s6, [#allocation5]  }
  0x1c   :  { %s235_s11 = scalar_lea.vmem %s39_s10, 16  ;;  %p240_p12 = scmp.lt.s32.totalorder %s39_s10, %s39_s10 }
  0x1d   :  { %p236_p11 = scmp.ne.s32.totalorder %s39_s10, %s235_s11  ;;  %p241_p13 = scmp.lt.s32.totalorder %s235_s11, %s235_s11 }
  0x1f   :  { %p242_p0 = por %p241_p13, %p240_p12 }
  0x21   :  { %p243_p1 = pnand %p242_p0, %p236_p11 }
  0x23   :  { %246 = shalt.err (!%p243_p1)
}
  0x24   :  { %s281_s12 = smov [#allocation8]  }
  0x25   :  { %41 = dma.vmem_to_smem %s39_s10, 16, %s281_s12, [#allocation6]  }
  0x26   :  { %269 = dma.done.wait [#allocation3], 256  }
  0x27   :  { %270 = vsyncadd [#allocation3], 4294967040 }
  0x28   :  { %271 = dma.done.wait [#allocation5], 64  }
  0x29   :  { %272 = vsyncadd [#allocation5], 4294967232 }
  0x2a   :  { %273 = dma.done.wait [#allocation6], 16  }
  0x2b   :  { %274 = vsyncadd [#allocation6], 4294967280 }
  0x2c   :  { %51 = sfence }
  0x2d   :  { %s54_s1 = sld [smem:[#allocation7]]  ;;  %s184_s13 = sld [smem:[#allocation7 + $0x1]]  ;;  %v52_v0 = vld [vmem:[#allocation2] sm:$0x3]  ;;  %v59_v1 = vld [vmem:[#allocation2 + $0x2] sm:$0x3] }
  0x2e   :  { %s185_s2 = sld [smem:[#allocation7 + $0x2]]  ;;  %s333_s14 = sld [smem:[#allocation7 + $0x3]]  ;;  %v53_v2 = vld [vmem:[#allocation2 + $0x8] sm:$0x3]  ;;  %v68_v3 = vld [vmem:[#allocation2 + $0x4] sm:$0x3] }
  0x2f   :  { %s335_s15 = sld [smem:[#allocation8]]  ;;  %v60_v4 = vld [vmem:[#allocation2 + $0xa] sm:$0x3]  ;;  %s339_s17 = sld [smem:[#allocation7 + $0x81]]  ;;  %v69_v6 = vld [vmem:[#allocation2 + $0xc] sm:$0x3] }
  0x30   :  { %s337_s16 = sld [smem:[#allocation7 + $0x80]]  ;;  %s341_s18 = sld [smem:[#allocation7 + $0x82]]  ;;  %v77_v10 = vld [vmem:[#allocation2 + $0x6] sm:$0x3]  ;;  %v78_v12 = vld [vmem:[#allocation2 + $0xe] sm:$0x3] }
  0x31   :  { %s343_s19 = sld [smem:[#allocation7 + $0x83]]  ;;  %s345_s20 = sld [smem:[#allocation8 + $0x1]]  ;;  %v91_v16 = vld [vmem:[#allocation2] sm:$0x3]  ;;  %v92_v17 = vld [vmem:[#allocation2 + $0x8] sm:$0x3] }
  0x32   :  { %v97_v21 = vld [vmem:[#allocation2 + $0x2] sm:$0x3]  ;;  %s349_s21 = sld [smem:[#allocation7 + $0x100]]  ;;  %s351_s24 = sld [smem:[#allocation7 + $0x101]]  ;;  %v105_v26 = vld [vmem:[#allocation2 + $0x4] sm:$0x3] }
  0x33   :  { %v55_v5 = vstv %s54_s1  ;;  %v62_v8 = vstv %s184_s13  ;;  %v113_v27 = vld [vmem:[#allocation2 + $0x6] sm:$0x3]  ;;  %s354_s25 = sld [smem:[#allocation7 + $0x102]]  ;;  %v98_v32 = vld [vmem:[#allocation2 + $0xa] sm:$0x3]  ;;  %s357_s26 = sld [smem:[#allocation7 + $0x103]] }
  0x34   :  { %v56_v7 = vmul.f32 %v55_v5, %v52_v0  ;;  %v71_v9 = vstv %s185_s2  ;;  %v57_v11 = vmul.f32 %v55_v5, %v53_v2  ;;  %v63_v13 = vmul.f32 %v62_v8, %v59_v1  ;;  %v106_v33 = vld [vmem:[#allocation2 + $0xc] sm:$0x3]  ;;  %v114_v38 = vld [vmem:[#allocation2 + $0xe] sm:$0x3]  ;;  %v128_v43 = vld [vmem:[#allocation2] sm:$0x3] }
  0x35   :  { %v72_v14 = vmul.f32 %v71_v9, %v68_v3  ;;  %v80_v15 = vstv %s333_s14  ;;  %v86_v18 = vstv %s335_s15  ;;  %v64_v19 = vmul.f32 %v62_v8, %v60_v4  ;;  %v134_v48 = vld [vmem:[#allocation2 + $0x2] sm:$0x3]  ;;  %s362_s27 = sld [smem:[#allocation8 + $0x2]]  ;;  %v142_v53 = vld [vmem:[#allocation2 + $0x4] sm:$0x3]  ;;  %s282_s28 = smov [#allocation9]  }
  0x36   :  { %v73_v20 = vmul.f32 %v71_v9, %v69_v6  ;;  %v65_v22 = vadd.f32 %v63_v13, %v56_v7  ;;  %v81_v23 = vmul.f32 %v80_v15, %v77_v10  ;;  %v82_v24 = vmul.f32 %v80_v15, %v78_v12  ;;  %v150_v58 = vld [vmem:[#allocation2 + $0x6] sm:$0x3]  ;;  %v129_v59 = vld [vmem:[#allocation2 + $0x8] sm:$0x3]  ;;  %v135_v60 = vld [vmem:[#allocation2 + $0xa] sm:$0x3] }
  0x37   :  { %v94_v25 = vstv %s337_s16  ;;  %v66_v28 = vadd.f32 %v64_v19, %v57_v11  ;;  %v100_v30 = vstv %s339_s17  ;;  %v108_v36 = vstv %s341_s18  ;;  %v143_v1 = vld [vmem:[#allocation2 + $0xc] sm:$0x3]  ;;  %v151_v5 = vld [vmem:[#allocation2 + $0xe] sm:$0x3]  ;;  %s170_s29 = sshll.u32 %s282_s28, 4  ;;  %s171_s29 = int_to_ptr.vmem [resolvable:$true] %s170_s29 }
  0x38   :  { %v95_v29 = vmul.f32 %v94_v25, %v91_v16  ;;  %v96_v31 = vmul.f32 %v94_v25, %v92_v17  ;;  %v74_v34 = vadd.f32 %v72_v14, %v65_v22  ;;  %v101_v35 = vmul.f32 %v100_v30, %v97_v21  ;;  %s247_s30 = scalar_lea.vmem %s171_s29, 192  ;;  %p252_p3 = scmp.lt.s32.totalorder %s171_s29, %s171_s29 }
  0x39   :  { %v116_v37 = vstv %s343_s19  ;;  %v75_v39 = vadd.f32 %v73_v20, %v66_v28  ;;  %v109_v40 = vmul.f32 %v108_v36, %v105_v26  ;;  %v122_v42 = vstv %s345_s20  ;;  %p248_p2 = scmp.ne.s32.totalorder %s171_s29, %s247_s30  ;;  %p253_p4 = scmp.lt.s32.totalorder %s247_s30, %s247_s30 }
  0x3a   :  { %v117_v41 = vmul.f32 %v116_v37, %v113_v27  ;;  %v83_v44 = vadd.f32 %v81_v23, %v74_v34  ;;  %v103_v45 = vadd.f32 %v101_v35, %v95_v29  ;;  %v102_v46 = vmul.f32 %v100_v30, %v98_v32 }
  0x3b   :  { %v110_v47 = vmul.f32 %v108_v36, %v106_v33  ;;  %v84_v49 = vadd.f32 %v82_v24, %v75_v39  ;;  %v118_v50 = vmul.f32 %v116_v37, %v114_v38  ;;  %v131_v51 = vstv %s349_s21  ;;  %p254_p5 = por %p253_p4, %p252_p3 }
  0x3c   :  { %v137_v52 = vstv %s351_s24  ;;  %v87_v54 = vadd.f32 %v86_v18, %v83_v44  ;;  %v111_v55 = vadd.f32 %v109_v40, %v103_v45  ;;  %v104_v56 = vadd.f32 %v102_v46, %v96_v31 }
  0x3d   :  { %v132_v57 = vmul.f32 %v131_v51, %v128_v43  ;;  %v88_v61 = vadd.f32 %v86_v18, %v84_v49  ;;  %v138_v62 = vmul.f32 %v137_v52, %v134_v48  ;;  %v145_v63 = vstv %s354_s25  ;;  %p255_p6 = pnand %p254_p5, %p248_p2 }
  0x3e   :  { %v153_v0 = vstv %s357_s26  ;;  %89 = vst [vmem:[#allocation9] sm:$0x3] %v87_v54  ;;  %v119_v2 = vadd.f32 %v117_v41, %v111_v55  ;;  %v112_v3 = vadd.f32 %v110_v47, %v104_v56  ;;  %v146_v4 = vmul.f32 %v145_v63, %v142_v53 }
  0x3f   :  { %90 = vst [vmem:[#allocation9 + $0x6] sm:$0x3] %v88_v61  ;;  %v140_v6 = vadd.f32 %v138_v62, %v132_v57  ;;  %v154_v7 = vmul.f32 %v153_v0, %v150_v58  ;;  %v133_v8 = vmul.f32 %v131_v51, %v129_v59  ;;  %v139_v9 = vmul.f32 %v137_v52, %v135_v60 }
  0x40   :  { %v123_v10 = vadd.f32 %v122_v42, %v119_v2  ;;  %v120_v11 = vadd.f32 %v118_v50, %v112_v3  ;;  %v147_v12 = vmul.f32 %v145_v63, %v143_v1  ;;  %v155_v15 = vmul.f32 %v153_v0, %v151_v5 }
  0x41   :  { %v148_v13 = vadd.f32 %v146_v4, %v140_v6  ;;  %v141_v14 = vadd.f32 %v139_v9, %v133_v8  ;;  %v159_v17 = vstv %s362_s27 }
  0x42   :  { %126 = vst [vmem:[#allocation9 + $0x2] sm:$0x3] %v123_v10  ;;  %v124_v16 = vadd.f32 %v122_v42, %v120_v11 }
  0x43   :  { %v156_v18 = vadd.f32 %v154_v7, %v148_v13  ;;  %v149_v19 = vadd.f32 %v147_v12, %v141_v14 }
  0x44   :  { %127 = vst [vmem:[#allocation9 + $0x8] sm:$0x3] %v124_v16 }
  0x45   :  { %v160_v20 = vadd.f32 %v159_v17, %v156_v18  ;;  %v157_v21 = vadd.f32 %v155_v15, %v149_v19 }
  0x47   :  { %163 = vst [vmem:[#allocation9 + $0x4] sm:$0x3] %v160_v20  ;;  %v161_v22 = vadd.f32 %v159_v17, %v157_v21 }
  0x49   :  { %164 = vst [vmem:[#allocation9 + $0xa] sm:$0x3] %v161_v22 }
  0x4a   :  { %258 = shalt.err (!%p255_p6)
}
  0x4b   :  { %s259_s6 = scalar_lea.hbm %s387_s3, 192 }
  0x4c   :  { %p260_p7 = scmp.ne.s32.totalorder %s387_s3, %s259_s6  ;;  %p263_p8 = scmp.lt.u32.totalorder %s259_s6, %s387_s3 }
  0x4e   :  { %p265_p9 = pnand %p263_p8, %p260_p7 }
  0x50   :  { %268 = shalt.err (!%p265_p9)
}
  0x51   :  { %176 = dma.vmem_to_hbm [thread:$0]  %s171_s29, 192, %s387_s3, [#allocation4], %s278_s22, %s278_s22, %s279_s23  }
  0x52   :  { %275 = dma.done.wait [#allocation4], 192  }
  0x53   :  { %276 = vsyncadd [#allocation4], 4294967104 }
  0x54   :  { %180 = vsyncpa [#allocation3], 1 }
  0x55   :  { %181 = vsyncpa [#allocation4], 1 }
  0x56   :  { %182 = vsyncpa [#allocation5], 1 }
  0x57   :  { %183 = vsyncpa [#allocation6], 1 }

</bundles_post_ra>
